<compile_context>
chip_gen: v7x
topology: tpu7x:2x2x1
jax: 0.10.0
libtpu: 0.0.40
codegen_flags: <defaults>
</compile_context>

<pallas_src>
import numpy as np
import jax
import jax.numpy as jnp
from jax.experimental import pallas as pl
from jax.experimental.pallas import tpu as pltpu

# ---------------- model hyper-parameters (small, deterministic) -------------
BATCH     = 2
C_IN      = 4          # input channels
H = W     = 16         # spatial
NUM_FTRS  = 32         # backbone feature width (stand-in for resnet18's 512)
CLASS_NUM = 8          # config.class_num
KSIZE     = 3

HP        = H + 2                  # zero-padded height            = 18
WPC       = (W + 2) * C_IN         # padded width * C              = 72
KPAD      = 256                    # 3*WPC = 216 padded to 2 lane tiles
WF        = W * NUM_FTRS           # flattened (w, f) lane axis    = 512
OUT_LANES = 128                    # lane-dense output slab width


# ------------------------- TensorCore count probe ---------------------------
_TC_PER_CHIP = None


def _tensorcores_per_chip():
    """2 on dual-TensorCore chips (v7x), else 1 (v5e/v6e)."""
    global _TC_PER_CHIP
    if _TC_PER_CHIP is None:
        tc = 1
        try:
            kind = jax.devices()[0].device_kind.lower()
            if "v7" in kind:
                tc = 2
        except Exception:
            tc = 1
        _TC_PER_CHIP = tc
    return _TC_PER_CHIP


# ---------------------------- Pallas kernel ---------------------------------
def _fused_backbone_kernel(x_ref, band_ref, bconv_ref, shead_ref, bfc_ref,
                           out_ref):
    """One grid step = one group of images (whole fused siamese batch, or half
    of it on dual-TensorCore chips).

    x_ref    : (1, npb*H, KPAD)   bf16  pre-banded padded rows
                                        [xp(h) | xp(h+1) | xp(h+2) | 0-pad]
    band_ref : (KPAD, WF)         bf16  banded (Toeplitz) 3x3 conv weights
    bconv_ref: (1, WF)            f32   conv bias tiled over w
    shead_ref: (WF, OUT_LANES)    bf16  fused avg-pool-over-w + fc head
    bfc_ref  : (1, OUT_LANES)     f32   fc bias in lanes [F, F+CLASS_NUM)
    out_ref  : (1, npb, OUT_LANES) f32  slab: feature lanes [0,F), logits [F,F+C)
    """
    npb = out_ref.shape[1]

    # 3x3 "same" conv as ONE bf16 MXU matmul (bands pre-concatenated on lanes).
    conv = jnp.dot(x_ref[0], band_ref[...],
                   preferred_element_type=jnp.float32)         # (rows, WF) f32
    act = jnp.maximum(conv + bconv_ref[...], 0.0)              # bias+ReLU f32

    # Fused (mean over w) + fc head: one bf16 MXU matmul into a 128-lane slab.
    pooled = jnp.dot(act.astype(jnp.bfloat16), shead_ref[...],
                     preferred_element_type=jnp.float32)       # (rows, 128)

    # Sum over h: cheap sublane reduce (rows = npb*H, H multiple of 8).
    feat_logits = jnp.sum(pooled.reshape(npb, H, OUT_LANES), axis=1)

    out_ref[0] = (feat_logits + bfc_ref[...]).astype(out_ref.dtype)


def _fused_backbone(xblk, params):
    """xblk: (NB, NPB*H, KPAD) bf16 -> slab (NB, NPB, OUT_LANES) f32."""
    NB, ROWS, _ = xblk.shape
    NPB = ROWS // H
    rows_total = NB * ROWS
    flops = (2 * rows_total * KPAD * WF            # banded conv matmul
             + 2 * rows_total * WF * OUT_LANES)    # fused pool+fc matmul
    bytes_accessed = (rows_total * KPAD * 2        # bf16 image slab
                      + KPAD * WF * 2              # bf16 band weights
                      + WF * OUT_LANES * 2         # bf16 fused head
                      + (WF + OUT_LANES) * 4       # f32 biases
                      + NB * NPB * OUT_LANES * 4)  # f32 output slab

    return pl.pallas_call(
        _fused_backbone_kernel,
        out_shape=jax.ShapeDtypeStruct((NB, NPB, OUT_LANES), jnp.float32),
        grid_spec=pl.GridSpec(
            grid=(NB,),
            in_specs=[
                pl.BlockSpec((1, ROWS, KPAD), lambda i: (i, 0, 0)),
                pl.BlockSpec((KPAD, WF), lambda i: (0, 0)),
                pl.BlockSpec((1, WF), lambda i: (0, 0)),
                pl.BlockSpec((WF, OUT_LANES), lambda i: (0, 0)),
                pl.BlockSpec((1, OUT_LANES), lambda i: (0, 0)),
            ],
            out_specs=pl.BlockSpec((1, NPB, OUT_LANES), lambda i: (i, 0, 0)),
        ),
        compiler_params=pltpu.CompilerParams(
            dimension_semantics=("parallel",)),    # v7x: one block per TC
        cost_estimate=pl.CostEstimate(flops=flops, transcendentals=0,
                                      bytes_accessed=bytes_accessed),
    )(xblk, params["band"], params["b_conv_t"], params["s_head"],
      params["b_fc_pad"])


# ------------------------------- glue ---------------------------------------
def _preprocess(x_nchw):
    """(B, C, H, W) f32 -> (B, H, KPAD) bf16 with the three 3x3 row-bands of the
    zero-padded NHWC image pre-concatenated along the lane axis."""
    x = jnp.transpose(x_nchw, (0, 2, 3, 1))                  # NHWC
    xp = jnp.pad(x, ((0, 0), (1, 1), (1, 1), (0, 0)))        # (B, 18, 18, C)
    xp = xp.reshape(x.shape[0], HP, WPC)                     # (B, 18, 72)
    bands = [xp[:, dh:dh + H, :] for dh in range(KSIZE)]     # 3 x (B, 16, 72)
    slab = jnp.concatenate(bands, axis=-1)                   # (B, 16, 216)
    slab = jnp.pad(slab, ((0, 0), (0, 0), (0, KPAD - KSIZE * WPC)))
    return slab.astype(jnp.bfloat16)                         # (B, 16, 256)


def init_params(key):
    """Synthetic weights (PyTorch conv layout (F, C, kh, kw)) + kernel layouts."""
    k1, k2, k3, k4 = jax.random.split(key, 4)
    w_conv = jax.random.normal(k1, (NUM_FTRS, C_IN, KSIZE, KSIZE),
                               jnp.float32) * 0.1
    b_conv = jax.random.normal(k2, (NUM_FTRS,), jnp.float32) * 0.01
    w_fc = jax.random.normal(k3, (NUM_FTRS, CLASS_NUM), jnp.float32) * 0.1
    b_fc = jax.random.normal(k4, (CLASS_NUM,), jnp.float32) * 0.01

    wc = np.asarray(w_conv)
    # banded (Toeplitz) conv weights, three dh bands stacked on the K axis:
    #   band[dh*WPC + wcol*C + c, w*F + f] = w_conv[f, c, dh, wcol - w]
    band = np.zeros((KPAD, WF), np.float32)
    for dh in range(KSIZE):
        for w_out in range(W):
            for dw in range(KSIZE):
                wcol = w_out + dw
                r0 = dh * WPC + wcol * C_IN
                band[r0:r0 + C_IN,
                     w_out * NUM_FTRS:(w_out + 1) * NUM_FTRS] = wc[:, :, dh, dw].T

    # conv bias tiled over w: index (w*F + f) -> b_conv[f]
    b_conv_t = np.tile(np.asarray(b_conv), W).reshape(1, WF)

    # pooling matrix (mean over w -> lanes [0,F)) fused with the padded fc head
    # (identity passthrough of the feature + logits in lanes [F, F+C)):
    #   s_head = s_pool @ w_fc_pad   (exact f32 precompute)
    s_pool = np.zeros((WF, OUT_LANES), np.float32)
    eye = np.eye(NUM_FTRS, dtype=np.float32) / float(H * W)
    for w_out in range(W):
        s_pool[w_out * NUM_FTRS:(w_out + 1) * NUM_FTRS, :NUM_FTRS] = eye
    w_fc_pad = np.zeros((OUT_LANES, OUT_LANES), np.float32)
    w_fc_pad[:NUM_FTRS, :NUM_FTRS] = np.eye(NUM_FTRS, dtype=np.float32)
    w_fc_pad[:NUM_FTRS, NUM_FTRS:NUM_FTRS + CLASS_NUM] = np.asarray(w_fc)
    s_head = s_pool @ w_fc_pad                              # (WF, OUT_LANES)

    b_fc_pad = np.zeros((1, OUT_LANES), np.float32)
    b_fc_pad[0, NUM_FTRS:NUM_FTRS + CLASS_NUM] = np.asarray(b_fc)

    return {
        # kernel-layout weights
        "band": jnp.asarray(band, jnp.bfloat16),
        "b_conv_t": jnp.asarray(b_conv_t, jnp.float32),
        "s_head": jnp.asarray(s_head, jnp.bfloat16),
        "b_fc_pad": jnp.asarray(b_fc_pad, jnp.float32),
        # raw weights (pure-JAX reference only)
        "w_conv": w_conv, "b_conv": b_conv, "w_fc": w_fc, "b_fc": b_fc,
    }


def siamese_forward(params, input1, input2=None, input3=None):
    """Mirrors SiameseNetwork.forward: shared-weight backbone on 1/2/3 inputs,
    fused into a single pallas_call over the stacked batch."""
    if input3 is not None:
        xs = [input1, input2, input3]
    elif input2 is not None:
        xs = [input1, input2]
    else:
        xs = [input1]
    n_branch = len(xs)
    B = xs[0].shape[0]
    N = n_branch * B

    xcat = jnp.concatenate([_preprocess(x) for x in xs], axis=0)  # (N, H, KPAD)

    nb = 2 if _tensorcores_per_chip() >= 2 else 1      # 1 block on v5e/v6e
    n_pad = N if N % nb == 0 else N + (nb - N % nb)    # keep both TCs busy (v7x)
    if n_pad != N:
        xcat = jnp.pad(xcat, ((0, n_pad - N), (0, 0), (0, 0)))
    xblk = xcat.reshape(nb, (n_pad // nb) * H, KPAD)

    slab = _fused_backbone(xblk, params).reshape(n_pad, OUT_LANES)[:N]
    feat = slab[:, :NUM_FTRS]
    out = slab[:, NUM_FTRS:NUM_FTRS + CLASS_NUM]

    results = []
    for i in range(n_branch):
        results.append(feat[i * B:(i + 1) * B])
        results.append(out[i * B:(i + 1) * B])
    return tuple(results)


# ---------------------- pure-JAX reference (for sanity) ---------------------
def _forward_once_ref(params, x_nchw):
    x = jnp.transpose(x_nchw, (0, 2, 3, 1))
    xp = jnp.pad(x, ((0, 0), (1, 1), (1, 1), (0, 0)))
    cols = [xp[:, dh:dh + H, dw:dw + W, :]
            for dh in range(KSIZE) for dw in range(KSIZE)]
    patches = jnp.concatenate(cols, axis=-1).reshape(
        x.shape[0] * H * W, KSIZE * KSIZE * C_IN)
    w_col = jnp.transpose(params["w_conv"], (2, 3, 1, 0)).reshape(
        KSIZE * KSIZE * C_IN, NUM_FTRS)
    conv = jnp.dot(patches.astype(jnp.bfloat16), w_col.astype(jnp.bfloat16),
                   preferred_element_type=jnp.float32)
    conv = conv.reshape(x.shape[0], H * W, NUM_FTRS)
    act = jnp.maximum(conv + params["b_conv"][None, None, :], 0.0)
    feat = jnp.mean(act, axis=1)
    out = feat @ params["w_fc"] + params["b_fc"][None, :]
    return feat, out


if __name__ == "__main__":
    key = jax.random.PRNGKey(0)
    kp, k1, k2, k3 = jax.random.split(key, 4)
    params = init_params(kp)

    x1 = jax.random.normal(k1, (BATCH, C_IN, H, W), jnp.float32)
    x2 = jax.random.normal(k2, (BATCH, C_IN, H, W), jnp.float32)
    x3 = jax.random.normal(k3, (BATCH, C_IN, H, W), jnp.float32)

    fwd = jax.jit(siamese_forward)

    # triplet call (most general branch of SiameseNetwork.forward)
    results = jax.block_until_ready(fwd(params, x1, x2, x3))
    # also exercise the single-input and pair branches
    jax.block_until_ready(fwd(params, x1))
    jax.block_until_ready(fwd(params, x1, x2))

    # sanity check against a pure-JAX reference (bf16 conv inputs, f32 rest).
    # Tolerance covers bf16 operands on the pooling/head matmul in the kernel.
    f1_ref, o1_ref = _forward_once_ref(params, x1)
    f2_ref, o2_ref = _forward_once_ref(params, x2)
    f3_ref, o3_ref = _forward_once_ref(params, x3)
    assert jnp.allclose(results[0], f1_ref, atol=1e-2, rtol=1e-2)
    assert jnp.allclose(results[1], o1_ref, atol=1e-2, rtol=1e-2)
    assert jnp.allclose(results[2], f2_ref, atol=1e-2, rtol=1e-2)
    assert jnp.allclose(results[3], o2_ref, atol=1e-2, rtol=1e-2)
    assert jnp.allclose(results[4], f3_ref, atol=1e-2, rtol=1e-2)
    assert jnp.allclose(results[5], o3_ref, atol=1e-2, rtol=1e-2)

    print("KERNEL_OK")
</pallas_src>

<mosaic_0001>
module attributes {stable_mosaic.version = 11 : i64} {
  func.func @_fused_backbone_kernel(%arg0: i32, %arg1: memref<1x96x256xbf16, #tpu.memory_space<vmem>>, %arg2: memref<256x512xbf16, #tpu.memory_space<vmem>>, %arg3: memref<1x512xf32, #tpu.memory_space<vmem>>, %arg4: memref<512x128xbf16, #tpu.memory_space<vmem>>, %arg5: memref<1x128xf32, #tpu.memory_space<vmem>>, %arg6: memref<1x6x128xf32, #tpu.memory_space<vmem>>) attributes {dimension_semantics = [#tpu.dimension_semantics<parallel>], iteration_bounds = array<i64: 1>, scalar_prefetch = 0 : i64, scratch_operands = 0 : i64, tpu.core_type = #tpu.core_type<tc>, window_params = [{transform_indices = @transform_0, window_bounds = array<i64: 1, 96, 256>}, {pipeline_mode = #tpu.pipeline_mode<synchronous>, transform_indices = @transform_1, window_bounds = array<i64: 256, 512>}, {pipeline_mode = #tpu.pipeline_mode<synchronous>, transform_indices = @transform_2, window_bounds = array<i64: 1, 512>}, {pipeline_mode = #tpu.pipeline_mode<synchronous>, transform_indices = @transform_3, window_bounds = array<i64: 512, 128>}, {pipeline_mode = #tpu.pipeline_mode<synchronous>, transform_indices = @transform_4, window_bounds = array<i64: 1, 128>}, {transform_indices = @transform_5, window_bounds = array<i64: 1, 6, 128>}]} {
    %c0 = arith.constant 0 : index
    %c0_0 = arith.constant 0 : index
    %c0_1 = arith.constant 0 : index
    %0 = vector.load %arg1[%c0, %c0_0, %c0_1] : memref<1x96x256xbf16, #tpu.memory_space<vmem>>, vector<1x96x256xbf16>
    %1 = vector.shape_cast %0 : vector<1x96x256xbf16> to vector<96x256xbf16>
    %c0_2 = arith.constant 0 : index
    %c0_3 = arith.constant 0 : index
    %2 = vector.load %arg2[%c0_2, %c0_3] : memref<256x512xbf16, #tpu.memory_space<vmem>>, vector<256x512xbf16>
    %cst = arith.constant dense<0.000000e+00> : vector<96x512xf32>
    %3 = tpu.matmul %1, %2, %cst {dimension_numbers = #tpu.dot_dimension_numbers<[1], [0], [0], [1], [0, 0, 1, 1], [], []>} : vector<96x256xbf16>, vector<256x512xbf16>, vector<96x512xf32> -> vector<96x512xf32>
    %c0_4 = arith.constant 0 : index
    %c0_5 = arith.constant 0 : index
    %4 = vector.load %arg3[%c0_4, %c0_5] : memref<1x512xf32, #tpu.memory_space<vmem>>, vector<1x512xf32>
    %5 = vector.broadcast %4 : vector<1x512xf32> to vector<96x512xf32>
    %6 = arith.addf %3, %5 : vector<96x512xf32>
    %cst_6 = arith.constant 0.000000e+00 : f32
    %7 = vector.broadcast %cst_6 : f32 to vector<96x512xf32>
    %8 = arith.maximumf %6, %7 : vector<96x512xf32>
    %9 = arith.truncf %8 : vector<96x512xf32> to vector<96x512xbf16>
    %c0_7 = arith.constant 0 : index
    %c0_8 = arith.constant 0 : index
    %10 = vector.load %arg4[%c0_7, %c0_8] : memref<512x128xbf16, #tpu.memory_space<vmem>>, vector<512x128xbf16>
    %cst_9 = arith.constant dense<0.000000e+00> : vector<96x128xf32>
    %11 = tpu.matmul %9, %10, %cst_9 {dimension_numbers = #tpu.dot_dimension_numbers<[1], [0], [0], [1], [0, 0, 1, 1], [], []>} : vector<96x512xbf16>, vector<512x128xbf16>, vector<96x128xf32> -> vector<96x128xf32>
    %12 = vector.shape_cast %11 : vector<96x128xf32> to vector<6x16x128xf32>
    %cst_10 = arith.constant dense<0.000000e+00> : vector<6x128xf32>
    %13 = vector.multi_reduction <add>, %12, %cst_10 [1] : vector<6x16x128xf32> to vector<6x128xf32>
    %c0_11 = arith.constant 0 : index
    %c0_12 = arith.constant 0 : index
    %14 = vector.load %arg5[%c0_11, %c0_12] : memref<1x128xf32, #tpu.memory_space<vmem>>, vector<1x128xf32>
    %15 = vector.broadcast %14 : vector<1x128xf32> to vector<6x128xf32>
    %16 = arith.addf %13, %15 : vector<6x128xf32>
    %c0_13 = arith.constant 0 : index
    %c0_14 = arith.constant 0 : index
    %c0_15 = arith.constant 0 : index
    %17 = vector.load %arg6[%c0_13, %c0_14, %c0_15] : memref<1x6x128xf32, #tpu.memory_space<vmem>>, vector<1x6x128xf32>
    %18 = vector.shape_cast %17 : vector<1x6x128xf32> to vector<6x128xf32>
    %19 = vector.shape_cast %16 : vector<6x128xf32> to vector<1x6x128xf32>
    tpu.vector_store %arg6[%c0_13, %c0_14, %c0_15], %19 {strides = array<i32>} : memref<1x6x128xf32, #tpu.memory_space<vmem>>, vector<1x6x128xf32>,
    return
  }
  func.func @transform_0(%arg0: i32) -> (i32, i32, i32) {
    %c0_i32 = arith.constant 0 : i32
    %c0_i32_0 = arith.constant 0 : i32
    %c0_i32_1 = arith.constant 0 : i32
    return %arg0, %c0_i32, %c0_i32_0 : i32, i32, i32
  }
  func.func @transform_1(%arg0: i32) -> (i32, i32) {
    %c0_i32 = arith.constant 0 : i32
    %c0_i32_0 = arith.constant 0 : i32
    %c0_i32_1 = arith.constant 0 : i32
    return %c0_i32, %c0_i32_0 : i32, i32
  }
  func.func @transform_2(%arg0: i32) -> (i32, i32) {
    %c0_i32 = arith.constant 0 : i32
    %c0_i32_0 = arith.constant 0 : i32
    %c0_i32_1 = arith.constant 0 : i32
    return %c0_i32, %c0_i32_0 : i32, i32
  }
  func.func @transform_3(%arg0: i32) -> (i32, i32) {
    %c0_i32 = arith.constant 0 : i32
    %c0_i32_0 = arith.constant 0 : i32
    %c0_i32_1 = arith.constant 0 : i32
    return %c0_i32, %c0_i32_0 : i32, i32
  }
  func.func @transform_4(%arg0: i32) -> (i32, i32) {
    %c0_i32 = arith.constant 0 : i32
    %c0_i32_0 = arith.constant 0 : i32
    %c0_i32_1 = arith.constant 0 : i32
    return %c0_i32, %c0_i32_0 : i32, i32
  }
  func.func @transform_5(%arg0: i32) -> (i32, i32, i32) {
    %c0_i32 = arith.constant 0 : i32
    %c0_i32_0 = arith.constant 0 : i32
    %c0_i32_1 = arith.constant 0 : i32
    return %arg0, %c0_i32, %c0_i32_0 : i32, i32, i32
  }
}

</mosaic_0001>

<bundles_post_ra>
// kernel: siamese_forward.1
= control target key start
LH: loop header
LB: loop body
LE: loop exit
PB: predicated region body
PF: predicated region fallthrough
CT: control target
= control target key end

     0   :  { %vm1237_vm0 = vcmask 1041409   ;;  %vm1240_vm1 = vcmask 1042434   ;;  %vm1243_vm2 = vcmask 1043459   ;;  %vm1246_vm3 = vcmask 1044484   ;;  %s2043_s1 = inlined_call_operand.vmem [shape: bf16[256,512], index: 1, kind: input, shape index: {}]   ;;  %s2044_s0 = inlined_call_operand.vmem [shape: bf16[1,96,256], index: 0, kind: input, shape index: {}]   ;;  %s2045_s3 = inlined_call_operand.vmem [shape: bf16[512,128], index: 3, kind: input, shape index: {}]   ;;  %s2046_s2 = inlined_call_operand.vmem [shape: f32[1,512], index: 2, kind: input, shape index: {}]   ;;  %s2047_s4 = inlined_call_operand.vmem [shape: f32[1,128], index: 4, kind: input, shape index: {}]   ;;  %s2048_s5 = inlined_call_operand.vmem [shape: f32[1,6,128], index: 5, kind: output, shape index: {}]  }
   0x1   :  { %v1470_v0 = vld [vmem:[%s2043_s1 + $0x4] ss:$16 sps:$4 sm:$0xff]   ;;  %v1472_v1 = vld [vmem:[%s2043_s1 + $0xc] ss:$16 sps:$4 sm:$0xff]   ;;  %v1474_v2 = vld [vmem:[%s2043_s1] ss:$16 sps:$4 sm:$0xff]  }
   0x2   :  { %499 = vmatprep.subr.bf16.mxu0 %v1470_v0  ;;  %v1475_v3 = vld [vmem:[%s2043_s1 + $0x8] ss:$16 sps:$4 sm:$0xff]   ;;  %592 = vmatprep.subr.bf16.mxu1 %v1472_v1  ;;  %v1476_v4 = vld [vmem:[%s2043_s1 + $0x24] ss:$16 sps:$4 sm:$0xff]   ;;  %v1478_v5 = vld [vmem:[%s2043_s1 + $0x2c] ss:$16 sps:$4 sm:$0xff]  }
   0x3   :  { %500 = vmatpush1.bf16.msra.mxu0 %v1474_v2  ;;  %593 = vmatpush1.bf16.msra.mxu1 %v1475_v3  ;;  %v1480_v6 = vld [vmem:[%s2043_s1 + $0x20] ss:$16 sps:$4 sm:$0xff]   ;;  %v1481_v7 = vld [vmem:[%s2043_s1 + $0x28] ss:$16 sps:$4 sm:$0xff]   ;;  %v1482_v8 = vld [vmem:[%s2043_s1 + $0x44] ss:$16 sps:$4 sm:$0xff]  }
   0x4   :  { %501 = vmatprep.subr.bf16.mxu0 %v1476_v4  ;;  %594 = vmatprep.subr.bf16.mxu1 %v1478_v5  ;;  %v1484_v9 = vld [vmem:[%s2043_s1 + $0x4c] ss:$16 sps:$4 sm:$0xff]   ;;  %v1486_v10 = vld [vmem:[%s2043_s1 + $0x40] ss:$16 sps:$4 sm:$0xff]   ;;  %v1487_v11 = vld [vmem:[%s2043_s1 + $0x48] ss:$16 sps:$4 sm:$0xff]  }
   0x5   :  { %v1488_v12 = vld [vmem:[%s2043_s1 + $0x64] ss:$16 sps:$4 sm:$0xff]   ;;  %v1490_v13 = vld [vmem:[%s2043_s1 + $0x6c] ss:$16 sps:$4 sm:$0xff]   ;;  %v1492_v14 = vld [vmem:[%s2043_s1 + $0x60] ss:$16 sps:$4 sm:$0xff]  }
   0x6   :  { %v1493_v15 = vld [vmem:[%s2043_s1 + $0x68] ss:$16 sps:$4 sm:$0xff]   ;;  %v1494_v16 = vld [vmem:[%s2043_s1 + $0x84] ss:$16 sps:$4 sm:$0xff]   ;;  %v1496_v17 = vld [vmem:[%s2043_s1 + $0x8c] ss:$16 sps:$4 sm:$0xff]  }
   0x7   :  { %502 = vmatpush1.bf16.msra.mxu0 %v1480_v6  ;;  %595 = vmatpush1.bf16.msra.mxu1 %v1481_v7  ;;  %v1498_v18 = vld [vmem:[%s2043_s1 + $0x80] ss:$16 sps:$4 sm:$0xff]   ;;  %v1499_v19 = vld [vmem:[%s2043_s1 + $0x88] ss:$16 sps:$4 sm:$0xff]   ;;  %v1500_v20 = vld [vmem:[%s2043_s1 + $0xa4] ss:$16 sps:$4 sm:$0xff]  }
   0x8   :  { %503 = vmatprep.subr.bf16.mxu0 %v1482_v8  ;;  %596 = vmatprep.subr.bf16.mxu1 %v1484_v9  ;;  %v1502_v21 = vld [vmem:[%s2043_s1 + $0xac] ss:$16 sps:$4 sm:$0xff]   ;;  %v1504_v22 = vld [vmem:[%s2043_s1 + $0xa0] ss:$16 sps:$4 sm:$0xff]   ;;  %v1505_v23 = vld [vmem:[%s2043_s1 + $0xa8] ss:$16 sps:$4 sm:$0xff]  }
   0x9   :  { %v1506_v24 = vld [vmem:[%s2043_s1 + $0xc4] ss:$16 sps:$4 sm:$0xff]   ;;  %v1508_v25 = vld [vmem:[%s2043_s1 + $0xcc] ss:$16 sps:$4 sm:$0xff]   ;;  %v1510_v26 = vld [vmem:[%s2043_s1 + $0xc0] ss:$16 sps:$4 sm:$0xff]  }
   0xa   :  { %v1511_v27 = vld [vmem:[%s2043_s1 + $0xc8] ss:$16 sps:$4 sm:$0xff]   ;;  %v1512_v28 = vld [vmem:[%s2043_s1 + $0xe4] ss:$16 sps:$4 sm:$0xff]   ;;  %v1514_v29 = vld [vmem:[%s2043_s1 + $0xec] ss:$16 sps:$4 sm:$0xff]  }
   0xb   :  { %504 = vmatpush1.bf16.msra.mxu0 %v1486_v10  ;;  %597 = vmatpush1.bf16.msra.mxu1 %v1487_v11  ;;  %v1516_v30 = vld [vmem:[%s2043_s1 + $0xe0] ss:$16 sps:$4 sm:$0xff]   ;;  %v1517_v31 = vld [vmem:[%s2043_s1 + $0xe8] ss:$16 sps:$4 sm:$0xff]   ;;  %v1518_v32 = vld [vmem:[%s2043_s1 + $0x104] ss:$16 sps:$4 sm:$0xff]  }
   0xc   :  { %505 = vmatprep.subr.bf16.mxu0 %v1488_v12  ;;  %598 = vmatprep.subr.bf16.mxu1 %v1490_v13  ;;  %v1520_v33 = vld [vmem:[%s2043_s1 + $0x10c] ss:$16 sps:$4 sm:$0xff]   ;;  %v1522_v34 = vld [vmem:[%s2043_s1 + $0x100] ss:$16 sps:$4 sm:$0xff]   ;;  %v1523_v35 = vld [vmem:[%s2043_s1 + $0x108] ss:$16 sps:$4 sm:$0xff]  }
   0xd   :  { %v1524_v36 = vld [vmem:[%s2043_s1 + $0x124] ss:$16 sps:$4 sm:$0xff]   ;;  %v1526_v37 = vld [vmem:[%s2043_s1 + $0x12c] ss:$16 sps:$4 sm:$0xff]   ;;  %v1528_v38 = vld [vmem:[%s2043_s1 + $0x120] ss:$16 sps:$4 sm:$0xff]  }
   0xe   :  { %v1529_v39 = vld [vmem:[%s2043_s1 + $0x128] ss:$16 sps:$4 sm:$0xff]   ;;  %v1530_v40 = vld [vmem:[%s2043_s1 + $0x144] ss:$16 sps:$4 sm:$0xff]   ;;  %v1532_v41 = vld [vmem:[%s2043_s1 + $0x14c] ss:$16 sps:$4 sm:$0xff]  }
   0xf   :  { %506 = vmatpush1.bf16.msra.mxu0 %v1492_v14  ;;  %599 = vmatpush1.bf16.msra.mxu1 %v1493_v15  ;;  %v1534_v42 = vld [vmem:[%s2043_s1 + $0x140] ss:$16 sps:$4 sm:$0xff]   ;;  %v1535_v43 = vld [vmem:[%s2043_s1 + $0x148] ss:$16 sps:$4 sm:$0xff]   ;;  %v1536_v44 = vld [vmem:[%s2043_s1 + $0x164] ss:$16 sps:$4 sm:$0xff]  }
  0x10   :  { %507 = vmatprep.subr.bf16.mxu0 %v1494_v16  ;;  %600 = vmatprep.subr.bf16.mxu1 %v1496_v17  ;;  %v1538_v45 = vld [vmem:[%s2043_s1 + $0x16c] ss:$16 sps:$4 sm:$0xff]   ;;  %v1540_v46 = vld [vmem:[%s2043_s1 + $0x160] ss:$16 sps:$4 sm:$0xff]   ;;  %v1541_v47 = vld [vmem:[%s2043_s1 + $0x168] ss:$16 sps:$4 sm:$0xff]  }
  0x11   :  { %v1568_v48 = vld [vmem:[%s2044_s0 + $0x4] ss:$8 sps:$4 sm:$0xff]   ;;  %v1546_v51 = vld [vmem:[%s2043_s1 + $0x180] ss:$16 sps:$4 sm:$0xff]   ;;  %v1547_v52 = vld [vmem:[%s2043_s1 + $0x188] ss:$16 sps:$4 sm:$0xff]  }
  0x12   :  { %v1542_v49 = vld [vmem:[%s2043_s1 + $0x184] ss:$16 sps:$4 sm:$0xff]   ;;  %v1544_v50 = vld [vmem:[%s2043_s1 + $0x18c] ss:$16 sps:$4 sm:$0xff]   ;;  %531 = vmatprep.mubr.bf16.mxu0 %v1568_v48  ;;  %624 = vmatprep.mubr.bf16.mxu1 %v1568_v48  ;;  %v1552_v55 = vld [vmem:[%s2043_s1 + $0x1a0] ss:$16 sps:$4 sm:$0xff]  }
  0x13   :  { %508 = vmatpush1.bf16.msra.mxu0 %v1498_v18  ;;  %601 = vmatpush1.bf16.msra.mxu1 %v1499_v19  ;;  %v1548_v53 = vld [vmem:[%s2043_s1 + $0x1a4] ss:$16 sps:$4 sm:$0xff]   ;;  %v1550_v54 = vld [vmem:[%s2043_s1 + $0x1ac] ss:$16 sps:$4 sm:$0xff]   ;;  %v1553_v56 = vld [vmem:[%s2043_s1 + $0x1a8] ss:$16 sps:$4 sm:$0xff]  }
  0x14   :  { %509 = vmatprep.subr.bf16.mxu0 %v1500_v20  ;;  %602 = vmatprep.subr.bf16.mxu1 %v1502_v21  ;;  %v1554_v57 = vld [vmem:[%s2043_s1 + $0x1c4] ss:$16 sps:$4 sm:$0xff]   ;;  %v1556_v58 = vld [vmem:[%s2043_s1 + $0x1cc] ss:$16 sps:$4 sm:$0xff]   ;;  %v1558_v59 = vld [vmem:[%s2043_s1 + $0x1c0] ss:$16 sps:$4 sm:$0xff]  }
  0x15   :  { %v1559_v60 = vld [vmem:[%s2043_s1 + $0x1c8] ss:$16 sps:$4 sm:$0xff]   ;;  %v1560_v61 = vld [vmem:[%s2043_s1 + $0x1e4] ss:$16 sps:$4 sm:$0xff]   ;;  %v1562_v62 = vld [vmem:[%s2043_s1 + $0x1ec] ss:$16 sps:$4 sm:$0xff]  }
  0x16   :  { %v1564_v63 = vld [vmem:[%s2043_s1 + $0x1e0] ss:$16 sps:$4 sm:$0xff]   ;;  %v1565_v0 = vld [vmem:[%s2043_s1 + $0x1e8] ss:$16 sps:$4 sm:$0xff]   ;;  %v1569_v4 = vld [vmem:[%s2044_s0 + $0x14] ss:$8 sps:$4 sm:$0xff]  }
  0x17   :  { %510 = vmatpush1.bf16.msra.mxu0 %v1504_v22  ;;  %603 = vmatpush1.bf16.msra.mxu1 %v1505_v23  ;;  %v1584_v1 = vld [vmem:[%s2045_s3 + $0x40] sm:$0xff]   ;;  %v1588_v7 = vld [vmem:[%s2045_s3 + $0x48] sm:$0xff]   ;;  %v1571_v11 = vld [vmem:[%s2044_s0 + $0x10] ss:$8 sps:$4 sm:$0xff]   ;;  %vm1249_vm4 = vcmask 1045509  }
  0x18   :  { %511 = vmatprep.subr.bf16.mxu0 %v1506_v24  ;;  %604 = vmatprep.subr.bf16.mxu1 %v1508_v25  ;;  %v1566_v2 = vld [vmem:[%s2044_s0] ss:$8 sps:$4 sm:$0xff]   ;;  %v1592_v12 = vld [vmem:[%s2045_s3 + $0x50] sm:$0xff]   ;;  %v1572_v13 = vld [vmem:[%s2044_s0 + $0x24] ss:$8 sps:$4 sm:$0xff]  }
  0x19   :  { %v1585_v3 = vld [vmem:[%s2045_s3 + $0xc0] sm:$0xff]   ;;  %v1589_v8 = vld [vmem:[%s2045_s3 + $0xc8] sm:$0xff]   ;;  %v1593_v14 = vld [vmem:[%s2045_s3 + $0xd0] sm:$0xff]  }
  0x1a   :  { %v1586_v5 = vld [vmem:[%s2045_s3] sm:$0xff]   ;;  %v1590_v9 = vld [vmem:[%s2045_s3 + $0x8] sm:$0xff]   ;;  %v1594_v15 = vld [vmem:[%s2045_s3 + $0x10] sm:$0xff]  }
  0x1b   :  { %512 = vmatpush1.bf16.msra.mxu0 %v1510_v26  ;;  %605 = vmatpush1.bf16.msra.mxu1 %v1511_v27  ;;  %v1587_v6 = vld [vmem:[%s2045_s3 + $0x80] sm:$0xff]   ;;  %v1591_v10 = vld [vmem:[%s2045_s3 + $0x88] sm:$0xff]   ;;  %v1595_v16 = vld [vmem:[%s2045_s3 + $0x90] sm:$0xff]  }
  0x1c   :  { %513 = vmatprep.subr.bf16.mxu0 %v1512_v28  ;;  %606 = vmatprep.subr.bf16.mxu1 %v1514_v29  ;;  %v1596_v17 = vld [vmem:[%s2045_s3 + $0x58] sm:$0xff]   ;;  %v1574_v20 = vld [vmem:[%s2044_s0 + $0x20] ss:$8 sps:$4 sm:$0xff]  }
  0x1d   :  { %v1597_v18 = vld [vmem:[%s2045_s3 + $0xd8] sm:$0xff]   ;;  %v1600_v23 = vld [vmem:[%s2045_s3 + $0x60] sm:$0xff]   ;;  %v1604_v27 = vld [vmem:[%s2045_s3 + $0x68] sm:$0xff]  }
  0x1e   :  { %v1598_v19 = vld [vmem:[%s2045_s3 + $0x18] sm:$0xff]   ;;  %v1601_v24 = vld [vmem:[%s2045_s3 + $0xe0] sm:$0xff]   ;;  %v1605_v28 = vld [vmem:[%s2045_s3 + $0xe8] sm:$0xff]  }
  0x1f   :  { %514 = vmatpush1.bf16.msra.mxu0 %v1516_v30  ;;  %607 = vmatpush1.bf16.msra.mxu1 %v1517_v31  ;;  %v1599_v21 = vld [vmem:[%s2045_s3 + $0x98] sm:$0xff]   ;;  %v1602_v25 = vld [vmem:[%s2045_s3 + $0x20] sm:$0xff]   ;;  %v1606_v29 = vld [vmem:[%s2045_s3 + $0x28] sm:$0xff]  }
  0x20   :  { %515 = vmatprep.subr.bf16.mxu0 %v1518_v32  ;;  %608 = vmatprep.subr.bf16.mxu1 %v1520_v33  ;;  %v1575_v22 = vld [vmem:[%s2044_s0 + $0x34] ss:$8 sps:$4 sm:$0xff]   ;;  %v1603_v26 = vld [vmem:[%s2045_s3 + $0xa0] sm:$0xff]   ;;  %v1607_v30 = vld [vmem:[%s2045_s3 + $0xa8] sm:$0xff]  }
  0x21   :  { %v1608_v31 = vld [vmem:[%s2045_s3 + $0x70] sm:$0xff]   ;;  %v97_v48 = vld [vmem:[%s2046_s2] sm:$0xf] }
  0x22   :  { %v1609_v32 = vld [vmem:[%s2045_s3 + $0xf0] sm:$0xff]  }
  0x23   :  { %516 = vmatpush1.bf16.msra.mxu0 %v1522_v34  ;;  %609 = vmatpush1.bf16.msra.mxu1 %v1523_v35  ;;  %v1577_v33 = vld [vmem:[%s2044_s0 + $0x30] ss:$8 sps:$4 sm:$0xff]   ;;  %v1578_v34 = vld [vmem:[%s2044_s0 + $0x44] ss:$8 sps:$4 sm:$0xff]  }
  0x24   :  { %517 = vmatprep.subr.bf16.mxu0 %v1524_v36  ;;  %610 = vmatprep.subr.bf16.mxu1 %v1526_v37  ;;  %v1610_v35 = vld [vmem:[%s2045_s3 + $0x30] sm:$0xff]   ;;  %v1580_v37 = vld [vmem:[%s2044_s0 + $0x40] ss:$8 sps:$4 sm:$0xff]  }
  0x25   :  { %v1611_v36 = vld [vmem:[%s2045_s3 + $0xb0] sm:$0xff]  }
  0x27   :  { %518 = vmatpush1.bf16.msra.mxu0 %v1528_v38  ;;  %611 = vmatpush1.bf16.msra.mxu1 %v1529_v39  ;;  %v1581_v38 = vld [vmem:[%s2044_s0 + $0x54] ss:$8 sps:$4 sm:$0xff]   ;;  %v1583_v39 = vld [vmem:[%s2044_s0 + $0x50] ss:$8 sps:$4 sm:$0xff]  }
  0x28   :  { %519 = vmatprep.subr.bf16.mxu0 %v1530_v40  ;;  %612 = vmatprep.subr.bf16.mxu1 %v1532_v41  ;;  %v1612_v40 = vld [vmem:[%s2045_s3 + $0x78] sm:$0xff]  }
  0x29   :  { %v1613_v41 = vld [vmem:[%s2045_s3 + $0xf8] sm:$0xff]  }
  0x2b   :  { %520 = vmatpush1.bf16.msra.mxu0 %v1534_v42  ;;  %613 = vmatpush1.bf16.msra.mxu1 %v1535_v43  ;;  %v1614_v42 = vld [vmem:[%s2045_s3 + $0x38] sm:$0xff]  }
  0x2c   :  { %521 = vmatprep.subr.bf16.mxu0 %v1536_v44  ;;  %614 = vmatprep.subr.bf16.mxu1 %v1538_v45  ;;  %v1615_v43 = vld [vmem:[%s2045_s3 + $0xb8] sm:$0xff]   ;;  %v99_v44 = vlaneseq }
  0x2e   :  { %v100_v45 = vshrl.u32 %v99_v44, 7 }
  0x2f   :  { %522 = vmatpush1.bf16.msra.mxu0 %v1540_v46  ;;  %615 = vmatpush1.bf16.msra.mxu1 %v1541_v47 }
  0x30   :  { %523 = vmatprep.subr.bf16.mxu0 %v1542_v49  ;;  %616 = vmatprep.subr.bf16.mxu1 %v1544_v50  ;;  %v101_v46 = vsub.s32 0, %v100_v45  ;;  %v109_v47 = vsub.s32 2, %v100_v45  ;;  %v105_v49 = vsub.s32 1, %v100_v45  ;;  %v113_v50 = vsub.s32 3, %v100_v45 }
  0x33   :  { %524 = vmatpush1.bf16.msra.mxu0 %v1546_v51  ;;  %617 = vmatpush1.bf16.msra.mxu1 %v1547_v52  ;;  %v1973_v51 = vrot.slane %v97_v48, %v101_v46  ;;  %v1975_v52 = vrot.slane %v97_v48, %v109_v47 }
  0x34   :  { %525 = vmatprep.subr.bf16.mxu0 %v1548_v53  ;;  %618 = vmatprep.subr.bf16.mxu1 %v1550_v54  ;;  %v1977_v53 = vrot.slane %v97_v48, %v105_v49  ;;  %v1979_v54 = vrot.slane %v97_v48, %v113_v50 }
  0x37   :  { %526 = vmatpush1.bf16.msra.mxu0 %v1552_v55  ;;  %619 = vmatpush1.bf16.msra.mxu1 %v1553_v56 }
  0x38   :  { %527 = vmatprep.subr.bf16.mxu0 %v1554_v57  ;;  %620 = vmatprep.subr.bf16.mxu1 %v1556_v58 }
  0x3b   :  { %528 = vmatpush1.bf16.msra.mxu0 %v1558_v59  ;;  %621 = vmatpush1.bf16.msra.mxu1 %v1559_v60 }
  0x3c   :  { %529 = vmatprep.subr.bf16.mxu0 %v1560_v61  ;;  %622 = vmatprep.subr.bf16.mxu1 %v1562_v62 }
  0x3f   :  { %530 = vmatpush1.bf16.msra.mxu0 %v1564_v63  ;;  %623 = vmatpush1.bf16.msra.mxu1 %v1565_v0 }
  0x40   :  { %1366 = vmatprep.subr.bf16.mxu0 %v1584_v1  ;;  %1418 = vmatprep.subr.bf16.mxu1 %v1585_v3 }
  0x42   :  { %532 = vmatmul.mubr.bf16.vlgmr.msra.gmra.mrb[0].mxu0 %v1566_v2  ;;  %625 = vmatmul.mubr.bf16.vlgmr.msra.gmra.mrb[0].mxu1 %v1566_v2 }
  0x43   :  { %541 = vmatprep.mubr.bf16.mxu0 %v1569_v4  ;;  %634 = vmatprep.mubr.bf16.mxu1 %v1569_v4 }
  0x44   :  { %1367 = vmatpush3.bf16.msra.mxu0 %v1586_v5  ;;  %1419 = vmatpush3.bf16.msra.mxu1 %v1587_v6 }
  0x45   :  { %1368 = vmatprep.subr.bf16.mxu0 %v1588_v7  ;;  %1420 = vmatprep.subr.bf16.mxu1 %v1589_v8 }
  0x48   :  { %1369 = vmatpush3.bf16.msra.mxu0 %v1590_v9  ;;  %1421 = vmatpush3.bf16.msra.mxu1 %v1591_v10 }
  0x49   :  { %1370 = vmatprep.subr.bf16.mxu0 %v1592_v12  ;;  %1422 = vmatprep.subr.bf16.mxu1 %v1593_v14 }
  0x4a   :  { %542 = vmatmul.mubr.bf16.gmra.mrb[4].mxu0 %v1571_v11  ;;  %635 = vmatmul.mubr.bf16.gmra.mrb[4].mxu1 %v1571_v11 }
  0x4b   :  { %551 = vmatprep.mubr.bf16.mxu0 %v1572_v13  ;;  %644 = vmatprep.mubr.bf16.mxu1 %v1572_v13 }
  0x4c   :  { %1371 = vmatpush3.bf16.msra.mxu0 %v1594_v15  ;;  %1423 = vmatpush3.bf16.msra.mxu1 %v1595_v16 }
  0x4d   :  { %1372 = vmatprep.subr.bf16.mxu0 %v1596_v17  ;;  %1424 = vmatprep.subr.bf16.mxu1 %v1597_v18 }
  0x50   :  { %1373 = vmatpush3.bf16.msra.mxu0 %v1598_v19  ;;  %1425 = vmatpush3.bf16.msra.mxu1 %v1599_v21 }
  0x51   :  { %1374 = vmatprep.subr.bf16.mxu0 %v1600_v23  ;;  %1426 = vmatprep.subr.bf16.mxu1 %v1601_v24 }
  0x52   :  { %552 = vmatmul.mubr.bf16.gmra.mrb[8].mxu0 %v1574_v20  ;;  %645 = vmatmul.mubr.bf16.gmra.mrb[8].mxu1 %v1574_v20 }
  0x53   :  { %561 = vmatprep.mubr.bf16.mxu0 %v1575_v22  ;;  %654 = vmatprep.mubr.bf16.mxu1 %v1575_v22 }
  0x54   :  { %1375 = vmatpush3.bf16.msra.mxu0 %v1602_v25  ;;  %1427 = vmatpush3.bf16.msra.mxu1 %v1603_v26 }
  0x55   :  { %1376 = vmatprep.subr.bf16.mxu0 %v1604_v27  ;;  %1428 = vmatprep.subr.bf16.mxu1 %v1605_v28 }
  0x58   :  { %1377 = vmatpush3.bf16.msra.mxu0 %v1606_v29  ;;  %1429 = vmatpush3.bf16.msra.mxu1 %v1607_v30 }
  0x59   :  { %1378 = vmatprep.subr.bf16.mxu0 %v1608_v31  ;;  %1430 = vmatprep.subr.bf16.mxu1 %v1609_v32 }
  0x5a   :  { %562 = vmatmul.mubr.bf16.gmra.mrb[12].mxu0 %v1577_v33  ;;  %655 = vmatmul.mubr.bf16.gmra.mrb[12].mxu1 %v1577_v33 }
  0x5b   :  { %571 = vmatprep.mubr.bf16.mxu0 %v1578_v34  ;;  %664 = vmatprep.mubr.bf16.mxu1 %v1578_v34 }
  0x5c   :  { %1379 = vmatpush3.bf16.msra.mxu0 %v1610_v35  ;;  %1431 = vmatpush3.bf16.msra.mxu1 %v1611_v36 }
  0x5d   :  { %1380 = vmatprep.subr.bf16.mxu0 %v1612_v40  ;;  %1432 = vmatprep.subr.bf16.mxu1 %v1613_v41 }
  0x60   :  { %1381 = vmatpush3.bf16.msra.mxu0 %v1614_v42  ;;  %1433 = vmatpush3.bf16.msra.mxu1 %v1615_v43 }
  0x62   :  { %572 = vmatmul.mubr.bf16.gmra.mrb[16].mxu0 %v1580_v37  ;;  %665 = vmatmul.mubr.bf16.gmra.mrb[16].mxu1 %v1580_v37 }
  0x63   :  { %581 = vmatprep.mubr.bf16.mxu0 %v1581_v38  ;;  %674 = vmatprep.mubr.bf16.mxu1 %v1581_v38 }
  0x6a   :  { %582 = vmatmul.mubr.bf16.gmra.mrb[20].mxu0 %v1583_v39  ;;  %675 = vmatmul.mubr.bf16.gmra.mrb[20].mxu1 %v1583_v39 }
 0x115   :  { %v533_v55 = vpop.f32.mrb[0].mxu0  ;;  %v626_v56 = vpop.f32.mrb[0].mxu1 }
 0x116   :  { %v534_v57 = vadd.f32 %v533_v55, %v1973_v51  ;;  %v627_v58 = vadd.f32 %v626_v56, %v1975_v52  ;;  %v535_v59 = vpop.f32.mrb[1].mxu0  ;;  %v628_v60 = vpop.f32.mrb[1].mxu1 }
 0x117   :  { %v536_v61 = vadd.f32 %v535_v59, %v1977_v53  ;;  %v629_v62 = vadd.f32 %v628_v60, %v1979_v54  ;;  %v537_v63 = vpop.f32.mrb[2].mxu0  ;;  %v630_v0 = vpop.f32.mrb[2].mxu1 }
 0x118   :  { %v538_v1 = vadd.f32 %v537_v63, %v1973_v51  ;;  %v631_v2 = vadd.f32 %v630_v0, %v1975_v52  ;;  %v539_v3 = vpop.f32.mrb[3].mxu0  ;;  %v632_v4 = vpop.f32.mrb[3].mxu1  ;;  %v685_v7 = vmax.f32 %v534_v57, 0.0  ;;  %v687_v8 = vmax.f32 %v627_v58, 0.0 }
 0x119   :  { %v540_v5 = vadd.f32 %v539_v3, %v1977_v53  ;;  %v633_v6 = vadd.f32 %v632_v4, %v1979_v54  ;;  %v686_v11 = vmax.f32 %v536_v61, 0.0  ;;  %v688_v12 = vmax.f32 %v629_v62, 0.0 }
 0x11a   :  { %v689_v9 = vmax.f32 %v538_v1, 0.0  ;;  %v691_v10 = vmax.f32 %v631_v2, 0.0 }
 0x11b   :  { %v690_v13 = vmax.f32 %v540_v5, 0.0  ;;  %v692_v14 = vmax.f32 %v633_v6, 0.0 }
 0x11c   :  { %v733_v15 = vpack.c.bf16 %v689_v9, %v685_v7  ;;  %v735_v16 = vpack.c.bf16 %v691_v10, %v687_v8 }
 0x11d   :  { %v734_v17 = vpack.c.bf16 %v690_v13, %v686_v11  ;;  %v736_v18 = vpack.c.bf16 %v692_v14, %v688_v12  ;;  %v543_v19 = vpop.f32.mrb[4].mxu0  ;;  %v636_v20 = vpop.f32.mrb[4].mxu1 }
 0x11e   :  { %v544_v21 = vadd.f32 %v543_v19, %v1973_v51  ;;  %v637_v22 = vadd.f32 %v636_v20, %v1975_v52  ;;  %v545_v23 = vpop.f32.mrb[5].mxu0  ;;  %v638_v24 = vpop.f32.mrb[5].mxu1 }
 0x11f   :  { %v546_v25 = vadd.f32 %v545_v23, %v1977_v53  ;;  %v639_v26 = vadd.f32 %v638_v24, %v1979_v54  ;;  %v547_v27 = vpop.f32.mrb[6].mxu0  ;;  %v640_v28 = vpop.f32.mrb[6].mxu1  ;;  %1045 = vmatprep.mubr.bf16.mxu0 %v734_v17  ;;  %1126 = vmatprep.mubr.bf16.mxu1 %v736_v18 }
 0x120   :  { %v548_v29 = vadd.f32 %v547_v27, %v1973_v51  ;;  %v641_v30 = vadd.f32 %v640_v28, %v1975_v52  ;;  %v549_v31 = vpop.f32.mrb[7].mxu0  ;;  %v642_v32 = vpop.f32.mrb[7].mxu1  ;;  %1046 = vmatmul.mubr.bf16.vlgmr.msra.gmra.mrb[24].mxu0 %v733_v15  ;;  %1127 = vmatmul.mubr.bf16.vlgmr.msra.gmra.mrb[24].mxu1 %v735_v16  ;;  %v693_v35 = vmax.f32 %v544_v21, 0.0  ;;  %v695_v36 = vmax.f32 %v637_v22, 0.0 }
 0x121   :  { %v550_v33 = vadd.f32 %v549_v31, %v1977_v53  ;;  %v643_v34 = vadd.f32 %v642_v32, %v1979_v54  ;;  %v694_v39 = vmax.f32 %v546_v25, 0.0  ;;  %v696_v40 = vmax.f32 %v639_v26, 0.0 }
 0x122   :  { %v697_v37 = vmax.f32 %v548_v29, 0.0  ;;  %v699_v38 = vmax.f32 %v641_v30, 0.0 }
 0x123   :  { %v698_v41 = vmax.f32 %v550_v33, 0.0  ;;  %v700_v42 = vmax.f32 %v643_v34, 0.0 }
 0x124   :  { %v737_v43 = vpack.c.bf16 %v697_v37, %v693_v35  ;;  %v739_v44 = vpack.c.bf16 %v699_v38, %v695_v36 }
 0x125   :  { %v738_v45 = vpack.c.bf16 %v698_v41, %v694_v39  ;;  %v740_v46 = vpack.c.bf16 %v700_v42, %v696_v40  ;;  %v553_v47 = vpop.f32.mrb[8].mxu0  ;;  %v646_v48 = vpop.f32.mrb[8].mxu1 }
 0x126   :  { %v554_v49 = vadd.f32 %v553_v47, %v1973_v51  ;;  %v647_v50 = vadd.f32 %v646_v48, %v1975_v52  ;;  %v555_v55 = vpop.f32.mrb[9].mxu0  ;;  %v648_v56 = vpop.f32.mrb[9].mxu1 }
 0x127   :  { %v556_v57 = vadd.f32 %v555_v55, %v1977_v53  ;;  %v649_v58 = vadd.f32 %v648_v56, %v1979_v54  ;;  %v557_v59 = vpop.f32.mrb[10].mxu0  ;;  %v650_v60 = vpop.f32.mrb[10].mxu1  ;;  %1053 = vmatprep.mubr.bf16.mxu0 %v738_v45  ;;  %1134 = vmatprep.mubr.bf16.mxu1 %v740_v46 }
 0x128   :  { %v558_v61 = vadd.f32 %v557_v59, %v1973_v51  ;;  %v651_v62 = vadd.f32 %v650_v60, %v1975_v52  ;;  %v559_v63 = vpop.f32.mrb[11].mxu0  ;;  %v652_v0 = vpop.f32.mrb[11].mxu1  ;;  %1054 = vmatmul.mubr.bf16.gmra.mrb[28].mxu0 %v737_v43  ;;  %1135 = vmatmul.mubr.bf16.gmra.mrb[28].mxu1 %v739_v44  ;;  %v701_v3 = vmax.f32 %v554_v49, 0.0  ;;  %v703_v4 = vmax.f32 %v647_v50, 0.0 }
 0x129   :  { %v560_v1 = vadd.f32 %v559_v63, %v1977_v53  ;;  %v653_v2 = vadd.f32 %v652_v0, %v1979_v54  ;;  %v702_v7 = vmax.f32 %v556_v57, 0.0  ;;  %v704_v8 = vmax.f32 %v649_v58, 0.0 }
 0x12a   :  { %v705_v5 = vmax.f32 %v558_v61, 0.0  ;;  %v707_v6 = vmax.f32 %v651_v62, 0.0 }
 0x12b   :  { %v706_v9 = vmax.f32 %v560_v1, 0.0  ;;  %v708_v10 = vmax.f32 %v653_v2, 0.0 }
 0x12c   :  { %v741_v11 = vpack.c.bf16 %v705_v5, %v701_v3  ;;  %v743_v12 = vpack.c.bf16 %v707_v6, %v703_v4 }
 0x12d   :  { %v742_v13 = vpack.c.bf16 %v706_v9, %v702_v7  ;;  %v744_v14 = vpack.c.bf16 %v708_v10, %v704_v8  ;;  %v563_v15 = vpop.f32.mrb[12].mxu0  ;;  %v656_v16 = vpop.f32.mrb[12].mxu1 }
 0x12e   :  { %v564_v17 = vadd.f32 %v563_v15, %v1973_v51  ;;  %v657_v18 = vadd.f32 %v656_v16, %v1975_v52  ;;  %v565_v19 = vpop.f32.mrb[13].mxu0  ;;  %v658_v20 = vpop.f32.mrb[13].mxu1 }
 0x12f   :  { %v566_v21 = vadd.f32 %v565_v19, %v1977_v53  ;;  %v659_v22 = vadd.f32 %v658_v20, %v1979_v54  ;;  %v567_v23 = vpop.f32.mrb[14].mxu0  ;;  %v660_v24 = vpop.f32.mrb[14].mxu1  ;;  %1061 = vmatprep.mubr.bf16.mxu0 %v742_v13  ;;  %1142 = vmatprep.mubr.bf16.mxu1 %v744_v14 }
 0x130   :  { %v568_v25 = vadd.f32 %v567_v23, %v1973_v51  ;;  %v661_v26 = vadd.f32 %v660_v24, %v1975_v52  ;;  %v569_v27 = vpop.f32.mrb[15].mxu0  ;;  %v662_v28 = vpop.f32.mrb[15].mxu1  ;;  %1062 = vmatmul.mubr.bf16.gmra.mrb[32].mxu0 %v741_v11  ;;  %1143 = vmatmul.mubr.bf16.gmra.mrb[32].mxu1 %v743_v12  ;;  %v709_v31 = vmax.f32 %v564_v17, 0.0  ;;  %v711_v32 = vmax.f32 %v657_v18, 0.0 }
 0x131   :  { %v570_v29 = vadd.f32 %v569_v27, %v1977_v53  ;;  %v663_v30 = vadd.f32 %v662_v28, %v1979_v54  ;;  %v710_v35 = vmax.f32 %v566_v21, 0.0  ;;  %v712_v36 = vmax.f32 %v659_v22, 0.0 }
 0x132   :  { %v713_v33 = vmax.f32 %v568_v25, 0.0  ;;  %v715_v34 = vmax.f32 %v661_v26, 0.0 }
 0x133   :  { %v714_v37 = vmax.f32 %v570_v29, 0.0  ;;  %v716_v38 = vmax.f32 %v663_v30, 0.0 }
 0x134   :  { %v745_v39 = vpack.c.bf16 %v713_v33, %v709_v31  ;;  %v747_v40 = vpack.c.bf16 %v715_v34, %v711_v32 }
 0x135   :  { %v746_v41 = vpack.c.bf16 %v714_v37, %v710_v35  ;;  %v748_v42 = vpack.c.bf16 %v716_v38, %v712_v36  ;;  %v573_v43 = vpop.f32.mrb[16].mxu0  ;;  %v666_v44 = vpop.f32.mrb[16].mxu1 }
 0x136   :  { %v574_v45 = vadd.f32 %v573_v43, %v1973_v51  ;;  %v667_v46 = vadd.f32 %v666_v44, %v1975_v52  ;;  %v575_v47 = vpop.f32.mrb[17].mxu0  ;;  %v668_v48 = vpop.f32.mrb[17].mxu1 }
 0x137   :  { %v576_v49 = vadd.f32 %v575_v47, %v1977_v53  ;;  %v669_v50 = vadd.f32 %v668_v48, %v1979_v54  ;;  %v577_v55 = vpop.f32.mrb[18].mxu0  ;;  %v670_v56 = vpop.f32.mrb[18].mxu1  ;;  %1069 = vmatprep.mubr.bf16.mxu0 %v746_v41  ;;  %1150 = vmatprep.mubr.bf16.mxu1 %v748_v42 }
 0x138   :  { %v578_v57 = vadd.f32 %v577_v55, %v1973_v51  ;;  %v671_v58 = vadd.f32 %v670_v56, %v1975_v52  ;;  %v579_v59 = vpop.f32.mrb[19].mxu0  ;;  %v672_v60 = vpop.f32.mrb[19].mxu1  ;;  %1070 = vmatmul.mubr.bf16.gmra.mrb[36].mxu0 %v745_v39  ;;  %1151 = vmatmul.mubr.bf16.gmra.mrb[36].mxu1 %v747_v40  ;;  %v717_v63 = vmax.f32 %v574_v45, 0.0  ;;  %v719_v0 = vmax.f32 %v667_v46, 0.0 }
 0x139   :  { %v580_v61 = vadd.f32 %v579_v59, %v1977_v53  ;;  %v673_v62 = vadd.f32 %v672_v60, %v1979_v54  ;;  %v718_v3 = vmax.f32 %v576_v49, 0.0  ;;  %v720_v4 = vmax.f32 %v669_v50, 0.0 }
 0x13a   :  { %v721_v1 = vmax.f32 %v578_v57, 0.0  ;;  %v723_v2 = vmax.f32 %v671_v58, 0.0 }
 0x13b   :  { %v722_v5 = vmax.f32 %v580_v61, 0.0  ;;  %v724_v6 = vmax.f32 %v673_v62, 0.0 }
 0x13c   :  { %v749_v7 = vpack.c.bf16 %v721_v1, %v717_v63  ;;  %v751_v8 = vpack.c.bf16 %v723_v2, %v719_v0 }
 0x13d   :  { %v750_v9 = vpack.c.bf16 %v722_v5, %v718_v3  ;;  %v752_v10 = vpack.c.bf16 %v724_v6, %v720_v4  ;;  %v583_v11 = vpop.f32.mrb[20].mxu0  ;;  %v676_v12 = vpop.f32.mrb[20].mxu1 }
 0x13e   :  { %v584_v13 = vadd.f32 %v583_v11, %v1973_v51  ;;  %v677_v14 = vadd.f32 %v676_v12, %v1975_v52  ;;  %v585_v15 = vpop.f32.mrb[21].mxu0  ;;  %v678_v16 = vpop.f32.mrb[21].mxu1 }
 0x13f   :  { %v586_v17 = vadd.f32 %v585_v15, %v1977_v53  ;;  %v679_v18 = vadd.f32 %v678_v16, %v1979_v54  ;;  %v587_v19 = vpop.f32.mrb[22].mxu0  ;;  %v680_v20 = vpop.f32.mrb[22].mxu1  ;;  %1077 = vmatprep.mubr.bf16.mxu0 %v750_v9  ;;  %1158 = vmatprep.mubr.bf16.mxu1 %v752_v10 }
 0x140   :  { %v588_v21 = vadd.f32 %v587_v19, %v1973_v51  ;;  %v681_v22 = vadd.f32 %v680_v20, %v1975_v52  ;;  %v589_v23 = vpop.f32.mrb[23].mxu0  ;;  %v682_v24 = vpop.f32.mrb[23].mxu1  ;;  %1078 = vmatmul.mubr.bf16.gmra.mrb[40].mxu0 %v749_v7  ;;  %1159 = vmatmul.mubr.bf16.gmra.mrb[40].mxu1 %v751_v8  ;;  %v725_v27 = vmax.f32 %v584_v13, 0.0  ;;  %v727_v28 = vmax.f32 %v677_v14, 0.0 }
 0x141   :  { %v590_v25 = vadd.f32 %v589_v23, %v1977_v53  ;;  %v683_v26 = vadd.f32 %v682_v24, %v1979_v54  ;;  %v726_v31 = vmax.f32 %v586_v17, 0.0  ;;  %v728_v32 = vmax.f32 %v679_v18, 0.0 }
 0x142   :  { %v729_v29 = vmax.f32 %v588_v21, 0.0  ;;  %v731_v30 = vmax.f32 %v681_v22, 0.0 }
 0x143   :  { %v730_v33 = vmax.f32 %v590_v25, 0.0  ;;  %v732_v34 = vmax.f32 %v683_v26, 0.0 }
 0x144   :  { %v753_v35 = vpack.c.bf16 %v729_v29, %v725_v27  ;;  %v755_v51 = vpack.c.bf16 %v731_v30, %v727_v28 }
 0x145   :  { %v754_v36 = vpack.c.bf16 %v730_v33, %v726_v31  ;;  %v756_v52 = vpack.c.bf16 %v732_v34, %v728_v32 }
 0x147   :  { %1085 = vmatprep.mubr.bf16.mxu0 %v754_v36  ;;  %1166 = vmatprep.mubr.bf16.mxu1 %v756_v52 }
 0x148   :  { %1086 = vmatmul.mubr.bf16.gmra.mrb[44].mxu0 %v753_v35  ;;  %1167 = vmatmul.mubr.bf16.gmra.mrb[44].mxu1 %v755_v51 }
 0x1f3   :  { %v1382_v37 = vpop.f32.mrb[24].mxu0  ;;  %v1434_v53 = vpop.f32.mrb[24].mxu1 }
 0x1f4   :  { %v1383_v38 = vpop.f32.mrb[25].mxu0  ;;  %v1435_v54 = vpop.f32.mrb[25].mxu1 }
 0x1f5   :  { %v1384_v39 = vadd.f32 %v1383_v38, %v1382_v37  ;;  %v1436_v40 = vadd.f32 %v1435_v54, %v1434_v53  ;;  %v1385_v41 = vpop.f32.mrb[26].mxu0  ;;  %v1437_v42 = vpop.f32.mrb[26].mxu1 }
 0x1f6   :  { %v1386_v43 = vpop.f32.mrb[27].mxu0  ;;  %v1438_v44 = vpop.f32.mrb[27].mxu1 }
 0x1f7   :  { %v1129_v45 = vadd.f32 %v1436_v40, %v1384_v39  ;;  %v1387_v46 = vadd.f32 %v1386_v43, %v1385_v41  ;;  %v1439_v47 = vadd.f32 %v1438_v44, %v1437_v42  ;;  %v2032_v42 = vld [vmem:[%s2047_s4] ss:$0 sm:$0xff] }
 0x1f9   :  { %v1132_v48 = vadd.f32 %v1439_v47, %v1387_v46 }
 0x1fb   :  { %v1175_v49 = vadd.f32 %v1132_v48, %v1129_v45  ;;  %v1388_v50 = vpop.f32.mrb[28].mxu0  ;;  %v1440_v55 = vpop.f32.mrb[28].mxu1 }
 0x1fc   :  { %v1389_v56 = vpop.f32.mrb[29].mxu0  ;;  %v1441_v57 = vpop.f32.mrb[29].mxu1 }
 0x1fd   :  { %v1176_v58 = vrot.slane %v1175_v49, 4  ;;  %v1390_v59 = vadd.f32 %v1389_v56, %v1388_v50  ;;  %v1442_v60 = vadd.f32 %v1441_v57, %v1440_v55  ;;  %v1391_v61 = vpop.f32.mrb[30].mxu0  ;;  %v1443_v62 = vpop.f32.mrb[30].mxu1 }
 0x1fe   :  { %v1392_v63 = vpop.f32.mrb[31].mxu0  ;;  %v1444_v0 = vpop.f32.mrb[31].mxu1 }
 0x1ff   :  { %v1177_v1 = vadd.f32 %v1176_v58, %v1175_v49  ;;  %v1137_v2 = vadd.f32 %v1442_v60, %v1390_v59  ;;  %v1393_v3 = vadd.f32 %v1392_v63, %v1391_v61  ;;  %v1445_v4 = vadd.f32 %v1444_v0, %v1443_v62 }
 0x201   :  { %v1140_v5 = vadd.f32 %v1445_v4, %v1393_v3  ;;  %v1178_v6 = vrot.slane %v1177_v1, 2 }
 0x203   :  { %v1182_v7 = vadd.f32 %v1140_v5, %v1137_v2  ;;  %v1394_v8 = vpop.f32.mrb[32].mxu0  ;;  %v1446_v9 = vpop.f32.mrb[32].mxu1  ;;  %v1179_v17 = vadd.f32 %v1178_v6, %v1177_v1 }
 0x204   :  { %v1395_v10 = vpop.f32.mrb[33].mxu0  ;;  %v1447_v11 = vpop.f32.mrb[33].mxu1 }
 0x205   :  { %v1183_v12 = vrot.slane %v1182_v7, 4  ;;  %v1396_v13 = vadd.f32 %v1395_v10, %v1394_v8  ;;  %v1448_v14 = vadd.f32 %v1447_v11, %v1446_v9  ;;  %v1397_v15 = vpop.f32.mrb[34].mxu0  ;;  %v1449_v16 = vpop.f32.mrb[34].mxu1  ;;  %v1180_v25 = vrot.slane %v1179_v17, 1 }
 0x206   :  { %v1398_v18 = vpop.f32.mrb[35].mxu0  ;;  %v1450_v19 = vpop.f32.mrb[35].mxu1 }
 0x207   :  { %v1184_v20 = vadd.f32 %v1183_v12, %v1182_v7  ;;  %v1145_v21 = vadd.f32 %v1448_v14, %v1396_v13  ;;  %v1399_v22 = vadd.f32 %v1398_v18, %v1397_v15  ;;  %v1451_v23 = vadd.f32 %v1450_v19, %v1449_v16 }
 0x208   :  { %v1181_v52 = vadd.f32 %v1180_v25, %v1179_v17 }
 0x209   :  { %v1185_v24 = vrot.slane %v1184_v20, 2  ;;  %v1148_v26 = vadd.f32 %v1451_v23, %v1399_v22 }
 0x20a   :  { %v1224_v47 = vadd.f32 %v2032_v42, %v1181_v52 }
 0x20b   :  { %v1186_v27 = vadd.f32 %v1185_v24, %v1184_v20  ;;  %v1400_v28 = vpop.f32.mrb[36].mxu0  ;;  %v1452_v29 = vpop.f32.mrb[36].mxu1  ;;  %v1189_v30 = vadd.f32 %v1148_v26, %v1145_v21 }
 0x20c   :  { %v1401_v31 = vpop.f32.mrb[37].mxu0  ;;  %v1453_v32 = vpop.f32.mrb[37].mxu1 }
 0x20d   :  { %v1187_v33 = vrot.slane %v1186_v27, 1  ;;  %v1402_v34 = vadd.f32 %v1401_v31, %v1400_v28  ;;  %v1454_v35 = vadd.f32 %v1453_v32, %v1452_v29  ;;  %v1403_v51 = vpop.f32.mrb[38].mxu0  ;;  %v1455_v36 = vpop.f32.mrb[38].mxu1  ;;  %v1190_v37 = vrot.slane %v1189_v30, 4 }
 0x20e   :  { %v1404_v53 = vpop.f32.mrb[39].mxu0  ;;  %v1456_v38 = vpop.f32.mrb[39].mxu1 }
 0x20f   :  { %v1188_v54 = vadd.f32 %v1187_v33, %v1186_v27  ;;  %v1153_v39 = vadd.f32 %v1454_v35, %v1402_v34  ;;  %v1405_v40 = vadd.f32 %v1404_v53, %v1403_v51  ;;  %v1457_v41 = vadd.f32 %v1456_v38, %v1455_v36 }
 0x210   :  { %v1191_v43 = vadd.f32 %v1190_v37, %v1189_v30 }
 0x211   :  { %v1225_v44 = vadd.f32 %v2032_v42, %v1188_v54  ;;  %v1156_v45 = vadd.f32 %v1457_v41, %v1405_v40 }
 0x212   :  { %v1192_v46 = vrot.slane %v1191_v43, 2 }
 0x213   :  { %v1236_v48 = vrot.slane %v1225_v44, 7  ;;  %v1196_v49 = vadd.f32 %v1156_v45, %v1153_v39  ;;  %v1406_v50 = vpop.f32.mrb[40].mxu0  ;;  %v1458_v55 = vpop.f32.mrb[40].mxu1 }
 0x214   :  { %v1193_v56 = vadd.f32 %v1192_v46, %v1191_v43  ;;  %v1407_v57 = vpop.f32.mrb[41].mxu0  ;;  %v1459_v58 = vpop.f32.mrb[41].mxu1 }
 0x215   :  { %v1238_v59 = vsel %vm1237_vm0, %v1236_v48, %v1224_v47  ;;  %v1197_v60 = vrot.slane %v1196_v49, 4  ;;  %v1408_v61 = vadd.f32 %v1407_v57, %v1406_v50  ;;  %v1460_v62 = vadd.f32 %v1459_v58, %v1458_v55  ;;  %v1409_v63 = vpop.f32.mrb[42].mxu0  ;;  %v1461_v0 = vpop.f32.mrb[42].mxu1 }
 0x216   :  { %v1194_v1 = vrot.slane %v1193_v56, 1  ;;  %v1410_v2 = vpop.f32.mrb[43].mxu0  ;;  %v1462_v3 = vpop.f32.mrb[43].mxu1 }
 0x217   :  { %v1198_v4 = vadd.f32 %v1197_v60, %v1196_v49  ;;  %v1161_v5 = vadd.f32 %v1460_v62, %v1408_v61  ;;  %v1411_v6 = vadd.f32 %v1410_v2, %v1409_v63  ;;  %v1463_v7 = vadd.f32 %v1462_v3, %v1461_v0 }
 0x218   :  { %v1195_v8 = vadd.f32 %v1194_v1, %v1193_v56 }
 0x219   :  { %v1199_v9 = vrot.slane %v1198_v4, 2  ;;  %v1164_v10 = vadd.f32 %v1463_v7, %v1411_v6 }
 0x21a   :  { %v1226_v11 = vadd.f32 %v2032_v42, %v1195_v8 }
 0x21b   :  { %v1200_v12 = vadd.f32 %v1199_v9, %v1198_v4  ;;  %v1203_v13 = vadd.f32 %v1164_v10, %v1161_v5  ;;  %v1412_v14 = vpop.f32.mrb[44].mxu0  ;;  %v1464_v15 = vpop.f32.mrb[44].mxu1 }
 0x21c   :  { %v1239_v16 = vrot.slane %v1226_v11, 6  ;;  %v1413_v17 = vpop.f32.mrb[45].mxu0  ;;  %v1465_v18 = vpop.f32.mrb[45].mxu1 }
 0x21d   :  { %v1201_v19 = vrot.slane %v1200_v12, 1  ;;  %v1204_v20 = vrot.slane %v1203_v13, 4  ;;  %v1414_v21 = vadd.f32 %v1413_v17, %v1412_v14  ;;  %v1466_v22 = vadd.f32 %v1465_v18, %v1464_v15  ;;  %v1415_v23 = vpop.f32.mrb[46].mxu0  ;;  %v1467_v24 = vpop.f32.mrb[46].mxu1 }
 0x21e   :  { %v1241_v25 = vsel %vm1240_vm1, %v1239_v16, %v1238_v59  ;;  %v1416_v26 = vpop.f32.mrb[47].mxu0  ;;  %v1468_v27 = vpop.f32.mrb[47].mxu1 }
 0x21f   :  { %v1202_v28 = vadd.f32 %v1201_v19, %v1200_v12  ;;  %v1205_v29 = vadd.f32 %v1204_v20, %v1203_v13  ;;  %v1169_v30 = vadd.f32 %v1466_v22, %v1414_v21  ;;  %v1417_v31 = vadd.f32 %v1416_v26, %v1415_v23 }
 0x220   :  { %v1469_v32 = vadd.f32 %v1468_v27, %v1467_v24 }
 0x221   :  { %v1227_v33 = vadd.f32 %v2032_v42, %v1202_v28  ;;  %v1206_v34 = vrot.slane %v1205_v29, 2 }
 0x222   :  { %v1172_v35 = vadd.f32 %v1469_v32, %v1417_v31 }
 0x223   :  { %v1242_v51 = vrot.slane %v1227_v33, 5  ;;  %v1207_v36 = vadd.f32 %v1206_v34, %v1205_v29 }
 0x224   :  { %v1210_v52 = vadd.f32 %v1172_v35, %v1169_v30 }
 0x225   :  { %v1244_v37 = vsel %vm1243_vm2, %v1242_v51, %v1241_v25  ;;  %v1208_v53 = vrot.slane %v1207_v36, 1 }
 0x226   :  { %v1211_v38 = vrot.slane %v1210_v52, 4 }
 0x227   :  { %v1209_v54 = vadd.f32 %v1208_v53, %v1207_v36 }
 0x228   :  { %v1212_v39 = vadd.f32 %v1211_v38, %v1210_v52 }
 0x229   :  { %v1228_v40 = vadd.f32 %v2032_v42, %v1209_v54 }
 0x22a   :  { %v1213_v41 = vrot.slane %v1212_v39, 2 }
 0x22b   :  { %v1245_v43 = vrot.slane %v1228_v40, 4 }
 0x22c   :  { %v1214_v44 = vadd.f32 %v1213_v41, %v1212_v39 }
 0x22d   :  { %v1247_v45 = vsel %vm1246_vm3, %v1245_v43, %v1244_v37 }
 0x22e   :  { %v1215_v46 = vrot.slane %v1214_v44, 1 }
 0x230   :  { %v1216_v47 = vadd.f32 %v1215_v46, %v1214_v44 }
 0x232   :  { %v1229_v48 = vadd.f32 %v2032_v42, %v1216_v47 }
 0x234   :  { %v1248_v49 = vrot.slane %v1229_v48, 3 }
 0x236   :  { %v1250_v50 = vsel %vm1249_vm4, %v1248_v49, %v1247_v45 }
 0x237   :  { %1252 = vst [vmem:[%s2048_s5] sm:$0x3f] %v1250_v50 }

</bundles_post_ra>
